<compile_context>
chip_gen: v7x
topology: tpu7x:2x2x1
jax: 0.10.0
libtpu: 0.0.40
codegen_flags: <defaults>
</compile_context>

<pallas_src>
import math

import jax
import jax.numpy as jnp
from jax.experimental import pallas as pl
from jax.experimental.pallas import tpu as pltpu  # noqa: F401  (TPU backend; defaults are fine at these sizes)

LANE = 128


def _round_up(n, m):
    return ((n + m - 1) // m) * m


def _pad2d(w, rows, cols):
    out = jnp.zeros((rows, cols), w.dtype)
    return out.at[: w.shape[0], : w.shape[1]].set(w)


# ----------------------------------------------------------------------------
# Fused Pallas kernel: whole GraphSAGE forward in one invocation
# ----------------------------------------------------------------------------
def _graphsage_kernel(a_ref, x_ref,
                      w1_ref, b1_ref,
                      w2_ref, b2_ref,
                      w3_ref, b3_ref,
                      wa_ref, ba_ref,
                      wfc_ref, bfc_ref,
                      out_ref):
    f32 = jnp.float32
    bf16 = jnp.bfloat16

    a = a_ref[...]                                      # (N, N) bf16, row-normalized mean-aggr

    def sage(h_bf, w_ref, b_ref):
        # mean aggregation on the MXU (bf16 operands, f32 accumulation)
        agg = jnp.dot(a, h_bf, preferred_element_type=f32)              # (N, D) f32
        # fused [agg | h] @ [wl ; wr] -> single MXU accumulation (lane-aligned concat)
        hcat = jnp.concatenate([agg.astype(bf16), h_bf], axis=1)        # (N, 2D) bf16
        z = jnp.dot(hcat, w_ref[...], preferred_element_type=f32) + b_ref[...]
        return jnp.maximum(z, 0.0)                                      # (N, D_out) f32

    h = sage(x_ref[...], w1_ref, b1_ref)
    # TODO(synk): nn.Dropout is stochastic only in train mode; inference forward = identity.
    h = sage(h.astype(bf16), w2_ref, b2_ref)
    h = sage(h.astype(bf16), w3_ref, b3_ref)

    # ---- attention: softmax over nodes (dim=0) of tanh(h @ Wa + ba) ---------
    # score as VPU multiply + lane reduction (avoids a 1-lane-wide MXU matmul)
    s = jnp.tanh(jnp.sum(h * wa_ref[...], axis=-1, keepdims=True) + ba_ref[...])   # (N, 1)
    s = s - jnp.max(s, axis=0, keepdims=True)
    e = jnp.exp(s)
    attn = e * pl.reciprocal(jnp.sum(e, axis=0, keepdims=True), approx=True)
    h = h * attn

    # ---- classifier head (lane-dense 128-wide output) ------------------------
    out = jnp.dot(h.astype(bf16), wfc_ref[...], preferred_element_type=f32) + bfc_ref[...]
    out_ref[...] = out.astype(out_ref.dtype)


# ----------------------------------------------------------------------------
# One-time graph preprocessing (outside the kernel; graph is static)
# ----------------------------------------------------------------------------
def build_mean_adjacency(edge_index, num_nodes):
    """Row-normalized dense mean-aggregation matrix A, matching PyG SAGEConv mean-aggr."""
    src, dst = edge_index[0], edge_index[1]
    counts = jnp.zeros((num_nodes, num_nodes), jnp.float32).at[dst, src].add(1.0)
    deg = jnp.sum(counts, axis=1, keepdims=True)
    a = counts / jnp.maximum(deg, 1.0)          # zero-degree rows stay all-zero
    return a.astype(jnp.bfloat16)


# ----------------------------------------------------------------------------
# One-time parameter preprocessing: transpose, lane-pad to 128, stack [wl; wr], bf16
# ----------------------------------------------------------------------------
def prepare_kernel_params(params):
    kp = {}
    for i, (wl, wr, b) in enumerate(params["convs"], 1):
        dout, din = wl.shape
        din_p, dout_p = _round_up(din, LANE), _round_up(dout, LANE)
        wl_p = _pad2d(wl.T, din_p, dout_p)                               # (din_p, dout_p)
        wr_p = _pad2d(wr.T, din_p, dout_p)
        kp[f"w{i}"] = jnp.concatenate([wl_p, wr_p], axis=0).astype(jnp.bfloat16)  # (2*din_p, dout_p)
        kp[f"b{i}"] = _pad2d(b.reshape(1, -1), 1, dout_p).astype(jnp.float32)
    hidden = params["att_w"].shape[1]
    hidden_p = _round_up(hidden, LANE)
    kp["wa"] = _pad2d(params["att_w"].reshape(1, -1), 1, hidden_p).astype(jnp.float32)
    kp["ba"] = params["att_b"].reshape(1, 1).astype(jnp.float32)
    out_dim = params["fc_w"].shape[0]
    out_p = _round_up(out_dim, LANE)
    kp["wfc"] = _pad2d(params["fc_w"].T, hidden_p, out_p).astype(jnp.bfloat16)
    kp["bfc"] = _pad2d(params["fc_b"].reshape(1, -1), 1, out_p).astype(jnp.float32)
    kp["out_dim"] = out_dim
    return kp


# ----------------------------------------------------------------------------
# Wrapper
# ----------------------------------------------------------------------------
def graphsage_pallas(x, a_norm, kparams):
    """x: (N, input_dim) node features; a_norm: (N, N) precomputed mean-aggregation matrix."""
    N, in_dim = x.shape
    in_p = _round_up(in_dim, LANE)
    x_p = _pad2d(x, N, in_p).astype(jnp.bfloat16)
    out_dim = kparams["out_dim"]
    out_p = kparams["bfc"].shape[1]

    args = (a_norm, x_p,
            kparams["w1"], kparams["b1"],
            kparams["w2"], kparams["b2"],
            kparams["w3"], kparams["b3"],
            kparams["wa"], kparams["ba"],
            kparams["wfc"], kparams["bfc"])

    def _full(arr):
        nd = arr.ndim
        return pl.BlockSpec(arr.shape, lambda *_: (0,) * nd)

    out_padded = pl.pallas_call(
        _graphsage_kernel,
        out_shape=jax.ShapeDtypeStruct((N, out_p), jnp.float32),
        in_specs=[_full(a) for a in args],
        out_specs=pl.BlockSpec((N, out_p), lambda *_: (0, 0)),
    )(*args)
    return out_padded[:, :out_dim]


# ----------------------------------------------------------------------------
# Pure-JAX reference (matches PyG SAGEConv mean-aggr semantics) for checking
# ----------------------------------------------------------------------------
def graphsage_ref(x, edge_index, params):
    src, dst = edge_index[0], edge_index[1]
    N = x.shape[0]
    h = x
    for (wl, wr, b) in params["convs"]:
        summed = jnp.zeros((N, h.shape[1]), jnp.float32).at[dst].add(h[src])
        deg = jnp.zeros((N,), jnp.float32).at[dst].add(1.0)
        agg = summed / jnp.maximum(deg, 1.0)[:, None]
        h = jax.nn.relu(agg @ wl.T + b + h @ wr.T)      # dropout = identity (eval)
    s = jnp.tanh(h @ params["att_w"].T + params["att_b"])
    w = jax.nn.softmax(s, axis=0)
    h = h * w
    return h @ params["fc_w"].T + params["fc_b"]


# ----------------------------------------------------------------------------
# Deterministic parameter init
# ----------------------------------------------------------------------------
def init_params(key, input_dim, hidden_dim, output_dim):
    layer_dims = [(input_dim, hidden_dim * 4),
                  (hidden_dim * 4, hidden_dim * 2),
                  (hidden_dim * 2, hidden_dim)]
    params = {"convs": []}
    for (din, dout) in layer_dims:
        key, k1, k2, k3 = jax.random.split(key, 4)
        s = 1.0 / math.sqrt(din)
        wl = jax.random.uniform(k1, (dout, din), jnp.float32, -s, s)   # lin_l (with bias)
        wr = jax.random.uniform(k2, (dout, din), jnp.float32, -s, s)   # lin_r (no bias)
        b = jax.random.uniform(k3, (dout,), jnp.float32, -s, s)
        params["convs"].append((wl, wr, b))
    key, k1, k2, k3, k4 = jax.random.split(key, 5)
    s = 1.0 / math.sqrt(hidden_dim)
    params["att_w"] = jax.random.uniform(k1, (1, hidden_dim), jnp.float32, -s, s)
    params["att_b"] = jax.random.uniform(k2, (1,), jnp.float32, -s, s)
    params["fc_w"] = jax.random.uniform(k3, (output_dim, hidden_dim), jnp.float32, -s, s)
    params["fc_b"] = jax.random.uniform(k4, (output_dim,), jnp.float32, -s, s)
    return params


# ----------------------------------------------------------------------------
if __name__ == "__main__":
    N, E = 16, 48                       # nodes, edges
    input_dim, hidden_dim, output_dim = 16, 32, 8

    key = jax.random.PRNGKey(0)
    key, kx, ks, kd = jax.random.split(key, 4)
    x = jax.random.normal(kx, (N, input_dim), jnp.float32)
    src = jax.random.randint(ks, (E,), 0, N, jnp.int32)
    dst = jax.random.randint(kd, (E,), 0, N, jnp.int32)
    edge_index = jnp.stack([src, dst], axis=0)

    params = init_params(key, input_dim, hidden_dim, output_dim)
    kparams = prepare_kernel_params(params)        # one-time weight prep
    a_norm = build_mean_adjacency(edge_index, N)   # one-time graph prep (static graph)

    out = graphsage_pallas(x, a_norm, kparams)
    out = jax.block_until_ready(out)

    ref = graphsage_ref(x, edge_index, params)
    assert out.shape == (N, output_dim), out.shape
    # bf16 MXU operands (~3 significant digits) + approx reciprocal -> loosened tolerance.
    assert jnp.allclose(out, ref, atol=2e-2, rtol=2e-2), float(jnp.abs(out - ref).max())

    print("KERNEL_OK")
</pallas_src>

<mosaic_0001>
module attributes {stable_mosaic.version = 11 : i64} {
  func.func @_graphsage_kernel(%arg0: memref<16x16xbf16, #tpu.memory_space<vmem>>, %arg1: memref<16x128xbf16, #tpu.memory_space<vmem>>, %arg2: memref<256x128xbf16, #tpu.memory_space<vmem>>, %arg3: memref<1x128xf32, #tpu.memory_space<vmem>>, %arg4: memref<256x128xbf16, #tpu.memory_space<vmem>>, %arg5: memref<1x128xf32, #tpu.memory_space<vmem>>, %arg6: memref<256x128xbf16, #tpu.memory_space<vmem>>, %arg7: memref<1x128xf32, #tpu.memory_space<vmem>>, %arg8: memref<1x128xf32, #tpu.memory_space<vmem>>, %arg9: memref<1x1xf32, #tpu.memory_space<vmem>>, %arg10: memref<128x128xbf16, #tpu.memory_space<vmem>>, %arg11: memref<1x128xf32, #tpu.memory_space<vmem>>, %arg12: memref<16x128xf32, #tpu.memory_space<vmem>>) attributes {dimension_semantics = [], scalar_prefetch = 0 : i64, scratch_operands = 0 : i64, tpu.core_type = #tpu.core_type<tc>} {
    %c0 = arith.constant 0 : index
    %c0_0 = arith.constant 0 : index
    %0 = vector.load %arg0[%c0, %c0_0] : memref<16x16xbf16, #tpu.memory_space<vmem>>, vector<16x16xbf16>
    %c0_1 = arith.constant 0 : index
    %c0_2 = arith.constant 0 : index
    %1 = vector.load %arg1[%c0_1, %c0_2] : memref<16x128xbf16, #tpu.memory_space<vmem>>, vector<16x128xbf16>
    %cst = arith.constant dense<0.000000e+00> : vector<16x128xf32>
    %2 = tpu.matmul %0, %1, %cst {dimension_numbers = #tpu.dot_dimension_numbers<[1], [0], [0], [1], [0, 0, 1, 1], [], []>} : vector<16x16xbf16>, vector<16x128xbf16>, vector<16x128xf32> -> vector<16x128xf32>
    %3 = arith.truncf %2 : vector<16x128xf32> to vector<16x128xbf16>
    %4 = tpu.concatenate %3, %1 in 1 : vector<16x128xbf16>, vector<16x128xbf16> -> vector<16x256xbf16>
    %c0_3 = arith.constant 0 : index
    %c0_4 = arith.constant 0 : index
    %5 = vector.load %arg2[%c0_3, %c0_4] : memref<256x128xbf16, #tpu.memory_space<vmem>>, vector<256x128xbf16>
    %cst_5 = arith.constant dense<0.000000e+00> : vector<16x128xf32>
    %6 = tpu.matmul %4, %5, %cst_5 {dimension_numbers = #tpu.dot_dimension_numbers<[1], [0], [0], [1], [0, 0, 1, 1], [], []>} : vector<16x256xbf16>, vector<256x128xbf16>, vector<16x128xf32> -> vector<16x128xf32>
    %c0_6 = arith.constant 0 : index
    %c0_7 = arith.constant 0 : index
    %7 = vector.load %arg3[%c0_6, %c0_7] : memref<1x128xf32, #tpu.memory_space<vmem>>, vector<1x128xf32>
    %8 = vector.broadcast %7 : vector<1x128xf32> to vector<16x128xf32>
    %9 = arith.addf %6, %8 : vector<16x128xf32>
    %cst_8 = arith.constant 0.000000e+00 : f32
    %10 = vector.broadcast %cst_8 : f32 to vector<16x128xf32>
    %11 = arith.maximumf %9, %10 : vector<16x128xf32>
    %12 = arith.truncf %11 : vector<16x128xf32> to vector<16x128xbf16>
    %cst_9 = arith.constant dense<0.000000e+00> : vector<16x128xf32>
    %13 = tpu.matmul %0, %12, %cst_9 {dimension_numbers = #tpu.dot_dimension_numbers<[1], [0], [0], [1], [0, 0, 1, 1], [], []>} : vector<16x16xbf16>, vector<16x128xbf16>, vector<16x128xf32> -> vector<16x128xf32>
    %14 = arith.truncf %13 : vector<16x128xf32> to vector<16x128xbf16>
    %15 = tpu.concatenate %14, %12 in 1 : vector<16x128xbf16>, vector<16x128xbf16> -> vector<16x256xbf16>
    %c0_10 = arith.constant 0 : index
    %c0_11 = arith.constant 0 : index
    %16 = vector.load %arg4[%c0_10, %c0_11] : memref<256x128xbf16, #tpu.memory_space<vmem>>, vector<256x128xbf16>
    %cst_12 = arith.constant dense<0.000000e+00> : vector<16x128xf32>
    %17 = tpu.matmul %15, %16, %cst_12 {dimension_numbers = #tpu.dot_dimension_numbers<[1], [0], [0], [1], [0, 0, 1, 1], [], []>} : vector<16x256xbf16>, vector<256x128xbf16>, vector<16x128xf32> -> vector<16x128xf32>
    %c0_13 = arith.constant 0 : index
    %c0_14 = arith.constant 0 : index
    %18 = vector.load %arg5[%c0_13, %c0_14] : memref<1x128xf32, #tpu.memory_space<vmem>>, vector<1x128xf32>
    %19 = vector.broadcast %18 : vector<1x128xf32> to vector<16x128xf32>
    %20 = arith.addf %17, %19 : vector<16x128xf32>
    %cst_15 = arith.constant 0.000000e+00 : f32
    %21 = vector.broadcast %cst_15 : f32 to vector<16x128xf32>
    %22 = arith.maximumf %20, %21 : vector<16x128xf32>
    %23 = arith.truncf %22 : vector<16x128xf32> to vector<16x128xbf16>
    %cst_16 = arith.constant dense<0.000000e+00> : vector<16x128xf32>
    %24 = tpu.matmul %0, %23, %cst_16 {dimension_numbers = #tpu.dot_dimension_numbers<[1], [0], [0], [1], [0, 0, 1, 1], [], []>} : vector<16x16xbf16>, vector<16x128xbf16>, vector<16x128xf32> -> vector<16x128xf32>
    %25 = arith.truncf %24 : vector<16x128xf32> to vector<16x128xbf16>
    %26 = tpu.concatenate %25, %23 in 1 : vector<16x128xbf16>, vector<16x128xbf16> -> vector<16x256xbf16>
    %c0_17 = arith.constant 0 : index
    %c0_18 = arith.constant 0 : index
    %27 = vector.load %arg6[%c0_17, %c0_18] : memref<256x128xbf16, #tpu.memory_space<vmem>>, vector<256x128xbf16>
    %cst_19 = arith.constant dense<0.000000e+00> : vector<16x128xf32>
    %28 = tpu.matmul %26, %27, %cst_19 {dimension_numbers = #tpu.dot_dimension_numbers<[1], [0], [0], [1], [0, 0, 1, 1], [], []>} : vector<16x256xbf16>, vector<256x128xbf16>, vector<16x128xf32> -> vector<16x128xf32>
    %c0_20 = arith.constant 0 : index
    %c0_21 = arith.constant 0 : index
    %29 = vector.load %arg7[%c0_20, %c0_21] : memref<1x128xf32, #tpu.memory_space<vmem>>, vector<1x128xf32>
    %30 = vector.broadcast %29 : vector<1x128xf32> to vector<16x128xf32>
    %31 = arith.addf %28, %30 : vector<16x128xf32>
    %cst_22 = arith.constant 0.000000e+00 : f32
    %32 = vector.broadcast %cst_22 : f32 to vector<16x128xf32>
    %33 = arith.maximumf %31, %32 : vector<16x128xf32>
    %c0_23 = arith.constant 0 : index
    %c0_24 = arith.constant 0 : index
    %34 = vector.load %arg8[%c0_23, %c0_24] : memref<1x128xf32, #tpu.memory_space<vmem>>, vector<1x128xf32>
    %35 = vector.broadcast %34 : vector<1x128xf32> to vector<16x128xf32>
    %36 = arith.mulf %33, %35 : vector<16x128xf32>
    %cst_25 = arith.constant dense<0.000000e+00> : vector<16xf32>
    %37 = vector.multi_reduction <add>, %36, %cst_25 [1] : vector<16x128xf32> to vector<16xf32>
    %38 = vector.shape_cast %37 : vector<16xf32> to vector<16x1xf32>
    %c0_26 = arith.constant 0 : index
    %c0_27 = arith.constant 0 : index
    %39 = vector.load %arg9[%c0_26, %c0_27] : memref<1x1xf32, #tpu.memory_space<vmem>>, vector<1x1xf32>
    %40 = vector.broadcast %39 : vector<1x1xf32> to vector<16x1xf32>
    %41 = arith.addf %38, %40 : vector<16x1xf32>
    %42 = math.tanh %41 : vector<16x1xf32>
    %cst_28 = arith.constant dense<0xFF800000> : vector<1xf32>
    %43 = vector.multi_reduction <maximumf>, %42, %cst_28 [0] : vector<16x1xf32> to vector<1xf32>
    %44 = vector.shape_cast %43 : vector<1xf32> to vector<1x1xf32>
    %45 = vector.broadcast %44 : vector<1x1xf32> to vector<16x1xf32>
    %46 = arith.subf %42, %45 : vector<16x1xf32>
    %47 = math.exp %46 : vector<16x1xf32>
    %cst_29 = arith.constant dense<0.000000e+00> : vector<1xf32>
    %48 = vector.multi_reduction <add>, %47, %cst_29 [0] : vector<16x1xf32> to vector<1xf32>
    %49 = vector.shape_cast %48 : vector<1xf32> to vector<1x1xf32>
    %50 = tpu.reciprocal %49 {approx = true} : vector<1x1xf32> -> vector<1x1xf32>
    %51 = vector.broadcast %50 : vector<1x1xf32> to vector<16x1xf32>
    %52 = arith.mulf %47, %51 : vector<16x1xf32>
    %53 = vector.broadcast %52 : vector<16x1xf32> to vector<16x128xf32>
    %54 = arith.mulf %33, %53 : vector<16x128xf32>
    %55 = arith.truncf %54 : vector<16x128xf32> to vector<16x128xbf16>
    %c0_30 = arith.constant 0 : index
    %c0_31 = arith.constant 0 : index
    %56 = vector.load %arg10[%c0_30, %c0_31] : memref<128x128xbf16, #tpu.memory_space<vmem>>, vector<128x128xbf16>
    %cst_32 = arith.constant dense<0.000000e+00> : vector<16x128xf32>
    %57 = tpu.matmul %55, %56, %cst_32 {dimension_numbers = #tpu.dot_dimension_numbers<[1], [0], [0], [1], [0, 0, 1, 1], [], []>} : vector<16x128xbf16>, vector<128x128xbf16>, vector<16x128xf32> -> vector<16x128xf32>
    %c0_33 = arith.constant 0 : index
    %c0_34 = arith.constant 0 : index
    %58 = vector.load %arg11[%c0_33, %c0_34] : memref<1x128xf32, #tpu.memory_space<vmem>>, vector<1x128xf32>
    %59 = vector.broadcast %58 : vector<1x128xf32> to vector<16x128xf32>
    %60 = arith.addf %57, %59 : vector<16x128xf32>
    %c0_35 = arith.constant 0 : index
    %c0_36 = arith.constant 0 : index
    %61 = vector.load %arg12[%c0_35, %c0_36] : memref<16x128xf32, #tpu.memory_space<vmem>>, vector<16x128xf32>
    tpu.vector_store %arg12[%c0_35, %c0_36], %60 {strides = array<i32>} : memref<16x128xf32, #tpu.memory_space<vmem>>, vector<16x128xf32>,
    return
  }
}

</mosaic_0001>

<bundles_post_ra>
// kernel: tpu_custom_call.1
= control target key start
LH: loop header
LB: loop body
LE: loop exit
PB: predicated region body
PF: predicated region fallthrough
CT: control target
= control target key end

     0   :  { %s1706_s0 = inlined_call_operand.hbm [shape: bf16[16,16], index: 0, kind: input, shape index: {}]   ;;  %s1707_s1 = inlined_call_operand.hbm [shape: bf16[16,128], index: 1, kind: input, shape index: {}]   ;;  %s1708_s2 = inlined_call_operand.hbm [shape: bf16[256,128], index: 2, kind: input, shape index: {}]   ;;  %s1709_s3 = inlined_call_operand.vmem [shape: f32[1,128], index: 3, kind: input, shape index: {}]   ;;  %s1710_s4 = inlined_call_operand.hbm [shape: bf16[256,128], index: 4, kind: input, shape index: {}]   ;;  %s1711_s5 = inlined_call_operand.vmem [shape: f32[1,128], index: 5, kind: input, shape index: {}]   ;;  %s1712_s6 = inlined_call_operand.hbm [shape: bf16[256,128], index: 6, kind: input, shape index: {}]   ;;  %s1713_s7 = inlined_call_operand.vmem [shape: f32[1,128], index: 7, kind: input, shape index: {}]   ;;  %s1714_s8 = inlined_call_operand.vmem [shape: f32[1,128], index: 8, kind: input, shape index: {}]   ;;  %s1715_s9 = inlined_call_operand.<no memory space> [shape: f32[1,1], index: 9, kind: input, shape index: {}]   ;;  %s1716_s10 = inlined_call_operand.hbm [shape: bf16[128,128], index: 10, kind: input, shape index: {}]   ;;  %s1717_s11 = inlined_call_operand.vmem [shape: f32[1,128], index: 11, kind: input, shape index: {}]   ;;  %s1718_s12 = inlined_call_operand.hbm [shape: f32[16,128], index: 12, kind: output, shape index: {}]  }
   0x1   :  { %v17_v0 = vstv %s1715_s9 }
   0x2   :  { %18 = vst [vmem:[#allocation2] sm:$0x1] %v17_v0 }
   0x3   :  { %19 = vsyncpa [#allocation4], 0 }
   0x4   :  { %20 = vsyncpa [#allocation7], 0 }
   0x5   :  { %21 = vsyncpa [#allocation10], 0 }
   0x6   :  { %22 = vsyncpa [#allocation13], 0 }
   0x7   :  { %23 = vsyncpa [#allocation5], 0  ;;  %s1441_s23 = smov [#allocation6]   ;;  %s1442_s25 = smov [#allocation9]  }
   0x8   :  { %s41_s24 = sshll.u32 %s1441_s23, 4  ;;  %s67_s26 = sshll.u32 %s1442_s25, 4  ;;  %s42_s24 = int_to_ptr.vmem [resolvable:$true] %s41_s24  ;;  %s1523_s26 = int_to_ptr.vmem [resolvable:$true] %s67_s26 }
   0x9   :  { %s1277_s29 = scalar_lea.hbm %s1707_s1, 128 }
   0xa   :  { %p1278_p0 = scmp.ne.s32.totalorder %s1707_s1, %s1277_s29  ;;  %p1281_p1 = scmp.lt.u32.totalorder %s1277_s29, %s1707_s1 }
   0xc   :  { %p1283_p2 = pnand %p1281_p1, %p1278_p0 }
   0xe   :  { %1286 = shalt.err (!%p1283_p2)
}
   0xf   :  { %s1287_s15 = scalar_lea.vmem %s42_s24, 128  ;;  %p1292_p4 = scmp.lt.s32.totalorder %s42_s24, %s42_s24 }
  0x10   :  { %p1288_p3 = scmp.ne.s32.totalorder %s42_s24, %s1287_s15  ;;  %p1293_p5 = scmp.lt.s32.totalorder %s1287_s15, %s1287_s15 }
  0x12   :  { %p1294_p6 = por %p1293_p5, %p1292_p4 }
  0x14   :  { %p1295_p7 = pnand %p1294_p6, %p1288_p3 }
  0x16   :  { %1298 = shalt.err (!%p1295_p7)
}
  0x17   :  { %s1443_s16 = smov 64   ;;  %s1444_s17 = smov 4  }
  0x18   :  { %47 = dma.hbm_to_vmem [thread:$0]  %s1707_s1, 128, %s42_s24, [#allocation7], %s1443_s16, %s1443_s16, %s1444_s17  }
  0x19   :  { %s1299_s22 = scalar_lea.hbm %s1710_s4, 2048 }
  0x1a   :  { %p1300_p8 = scmp.ne.s32.totalorder %s1710_s4, %s1299_s22  ;;  %p1303_p9 = scmp.lt.u32.totalorder %s1299_s22, %s1710_s4 }
  0x1c   :  { %p1305_p10 = pnand %p1303_p9, %p1300_p8 }
  0x1e   :  { %1308 = shalt.err (!%p1305_p10)
}
  0x1f   :  { %s1309_s29 = scalar_lea.vmem %s1523_s26, 2048  ;;  %p1314_p12 = scmp.lt.s32.totalorder %s1523_s26, %s1523_s26 }
  0x20   :  { %p1310_p11 = scmp.ne.s32.totalorder %s1523_s26, %s1309_s29  ;;  %p1315_p13 = scmp.lt.s32.totalorder %s1309_s29, %s1309_s29 }
  0x22   :  { %p1316_p0 = por %p1315_p13, %p1314_p12 }
  0x24   :  { %p1317_p1 = pnand %p1316_p0, %p1310_p11 }
  0x26   :  { %1320 = shalt.err (!%p1317_p1)
}
  0x27   :  { %73 = dma.hbm_to_vmem [thread:$0]  %s1710_s4, 2048, %s1523_s26, [#allocation10], %s1443_s16, %s1443_s16, %s1444_s17  }
  0x28   :  { %s1445_s30 = smov [#allocation3]   ;;  %s1446_s9 = smov [#allocation8]  }
  0x29   :  { %s29_s13 = sshll.u32 %s1445_s30, 4  ;;  %s53_s14 = sshll.u32 %s1446_s9, 4  ;;  %s30_s13 = int_to_ptr.vmem [resolvable:$true] %s29_s13  ;;  %s1560_s14 = int_to_ptr.vmem [resolvable:$true] %s53_s14 }
  0x2a   :  { %s1321_s19 = scalar_lea.hbm %s1706_s0, 128 }
  0x2b   :  { %p1322_p2 = scmp.ne.s32.totalorder %s1706_s0, %s1321_s19  ;;  %p1325_p3 = scmp.lt.u32.totalorder %s1321_s19, %s1706_s0 }
  0x2d   :  { %p1327_p4 = pnand %p1325_p3, %p1322_p2 }
  0x2f   :  { %1330 = shalt.err (!%p1327_p4)
}
  0x30   :  { %s1331_s4 = scalar_lea.vmem %s30_s13, 128  ;;  %p1336_p6 = scmp.lt.s32.totalorder %s30_s13, %s30_s13 }
  0x31   :  { %p1332_p5 = scmp.ne.s32.totalorder %s30_s13, %s1331_s4  ;;  %p1337_p7 = scmp.lt.s32.totalorder %s1331_s4, %s1331_s4 }
  0x33   :  { %p1338_p8 = por %p1337_p7, %p1336_p6 }
  0x35   :  { %p1339_p9 = pnand %p1338_p8, %p1332_p5 }
  0x37   :  { %1342 = shalt.err (!%p1339_p9)
}
  0x38   :  { %35 = dma.hbm_to_vmem [thread:$0]  %s1706_s0, 128, %s30_s13, [#allocation4], %s1443_s16, %s1443_s16, %s1444_s17  }
  0x39   :  { %s1343_s29 = scalar_lea.hbm %s1708_s2, 2048 }
  0x3a   :  { %p1344_p10 = scmp.ne.s32.totalorder %s1708_s2, %s1343_s29  ;;  %p1347_p11 = scmp.lt.u32.totalorder %s1343_s29, %s1708_s2 }
  0x3c   :  { %p1349_p12 = pnand %p1347_p11, %p1344_p10 }
  0x3e   :  { %1352 = shalt.err (!%p1349_p12)
}
  0x3f   :  { %s1353_s15 = scalar_lea.vmem %s1560_s14, 2048  ;;  %p1358_p0 = scmp.lt.s32.totalorder %s1560_s14, %s1560_s14 }
  0x40   :  { %p1354_p13 = scmp.ne.s32.totalorder %s1560_s14, %s1353_s15  ;;  %p1359_p1 = scmp.lt.s32.totalorder %s1353_s15, %s1353_s15 }
  0x42   :  { %p1360_p2 = por %p1359_p1, %p1358_p0 }
  0x44   :  { %p1361_p3 = pnand %p1360_p2, %p1354_p13 }
  0x46   :  { %1364 = shalt.err (!%p1361_p3)
}
  0x47   :  { %59 = dma.hbm_to_vmem [thread:$0]  %s1708_s2, 2048, %s1560_s14, [#allocation7], %s1443_s16, %s1443_s16, %s1444_s17  }
  0x48   :  { %s1447_s18 = smov [#allocation11]   ;;  %s1448_s20 = smov [#allocation12]  }
  0x49   :  { %s81_s19 = sshll.u32 %s1447_s18, 4  ;;  %s99_s21 = sshll.u32 %s1448_s20, 4  ;;  %s82_s19 = int_to_ptr.vmem [resolvable:$true] %s81_s19  ;;  %s1597_s21 = int_to_ptr.vmem [resolvable:$true] %s99_s21 }
  0x4a   :  { %s1365_s4 = scalar_lea.hbm %s1712_s6, 2048 }
  0x4b   :  { %p1366_p4 = scmp.ne.s32.totalorder %s1712_s6, %s1365_s4  ;;  %p1369_p5 = scmp.lt.u32.totalorder %s1365_s4, %s1712_s6 }
  0x4d   :  { %p1371_p6 = pnand %p1369_p5, %p1366_p4 }
  0x4f   :  { %1374 = shalt.err (!%p1371_p6)
}
  0x50   :  { %s1375_s2 = scalar_lea.vmem %s82_s19, 2048  ;;  %p1380_p8 = scmp.lt.s32.totalorder %s82_s19, %s82_s19 }
  0x51   :  { %p1376_p7 = scmp.ne.s32.totalorder %s82_s19, %s1375_s2  ;;  %p1381_p9 = scmp.lt.s32.totalorder %s1375_s2, %s1375_s2 }
  0x53   :  { %p1382_p10 = por %p1381_p9, %p1380_p8 }
  0x55   :  { %p1383_p11 = pnand %p1382_p10, %p1376_p7 }
  0x57   :  { %1386 = shalt.err (!%p1383_p11)
}
  0x58   :  { %87 = dma.hbm_to_vmem [thread:$0]  %s1712_s6, 2048, %s82_s19, [#allocation10], %s1443_s16, %s1443_s16, %s1444_s17  }
  0x59   :  { %s1387_s30 = scalar_lea.hbm %s1716_s10, 1024 }
  0x5a   :  { %p1388_p12 = scmp.ne.s32.totalorder %s1716_s10, %s1387_s30  ;;  %p1391_p13 = scmp.lt.u32.totalorder %s1387_s30, %s1716_s10 }
  0x5c   :  { %p1393_p0 = pnand %p1391_p13, %p1388_p12 }
  0x5e   :  { %1396 = shalt.err (!%p1393_p0)
}
  0x5f   :  { %s1397_s18 = scalar_lea.vmem %s1597_s21, 1024  ;;  %p1402_p2 = scmp.lt.s32.totalorder %s1597_s21, %s1597_s21 }
  0x60   :  { %p1398_p1 = scmp.ne.s32.totalorder %s1597_s21, %s1397_s18  ;;  %p1403_p3 = scmp.lt.s32.totalorder %s1397_s18, %s1397_s18 }
  0x62   :  { %p1404_p4 = por %p1403_p3, %p1402_p2 }
  0x64   :  { %p1405_p5 = pnand %p1404_p4, %p1398_p1 }
  0x66   :  { %1408 = shalt.err (!%p1405_p5)
}
  0x67   :  { %105 = dma.hbm_to_vmem [thread:$0]  %s1716_s10, 1024, %s1597_s21, [#allocation13], %s1443_s16, %s1443_s16, %s1444_s17  }
  0x68   :  { %1431 = dma.done.wait [#allocation4], 128  }
  0x69   :  { %1432 = vsyncadd [#allocation4], 4294967168 }
  0x6a   :  { %1433 = dma.done.wait [#allocation7], 2176  }
  0x6b   :  { %1434 = vsyncadd [#allocation7], 4294965120 }
  0x6c   :  { %1435 = dma.done.wait [#allocation10], 4096  }
  0x6d   :  { %1436 = vsyncadd [#allocation10], 4294963200 }
  0x6e   :  { %1437 = dma.done.wait [#allocation13], 1024  }
  0x6f   :  { %1438 = vsyncadd [#allocation13], 4294966272  ;;  %v1449_v1 = vmov 0.0   ;;  %vm1450_vm0 = vmmov 0   ;;  %v1209_v2 = vld [vmem:[#allocation6] sm:$0xff]   ;;  %v1637_v3 = vld [vmem:[#allocation3] sm:$0xff]  }
  0x70   :  { %1155 = vmatprep.subr.bf16.mxu0 %v1449_v1  ;;  %1157 = vmatprep.mubr.msk.bf16.mxu0 %vm1450_vm0, %v1449_v1  ;;  %vm142_vm1 = vcmask 130048   ;;  %v1211_v4 = vld [vmem:[#allocation8 + $0x40] sm:$0xff]   ;;  %v1213_v6 = vld [vmem:[#allocation8 + $0x48] sm:$0xff]   ;;  %v1215_v8 = vld [vmem:[#allocation8 + $0x50] sm:$0xff]   ;;  %vm832_vm2 = vcmask 7168   ;;  %s1452_s23 = smov [#allocation14]  }
  0x71   :  { %1156 = vmatpush3.bf16.msra.mxu0 %v1209_v2  ;;  %355 = vmatprep.mubr.bf16.mxu1 %v1209_v2  ;;  %v1212_v5 = vld [vmem:[#allocation8] sm:$0xff]   ;;  %v1214_v7 = vld [vmem:[#allocation8 + $0x8] sm:$0xff]   ;;  %v1216_v9 = vld [vmem:[#allocation8 + $0x10] sm:$0xff]   ;;  %s992_s4 = sshll.u32 %s1452_s23, 4  ;;  %s993_s4 = int_to_ptr.vmem [resolvable:$true] %s992_s4 }
  0x72   :  { %1161 = vmatprep.subr.bf16.mxu0 %v1449_v1  ;;  %1076 = vmatprep.subr.bf16.mxu1 %v1211_v4  ;;  %v1217_v10 = vld [vmem:[#allocation8 + $0x58] sm:$0xff]   ;;  %v1219_v12 = vld [vmem:[#allocation8 + $0x60] sm:$0xff]   ;;  %v1221_v14 = vld [vmem:[#allocation8 + $0x68] sm:$0xff]   ;;  %s1409_s26 = scalar_lea.vmem %s993_s4, 256  ;;  %p1414_p7 = scmp.lt.s32.totalorder %s993_s4, %s993_s4 }
  0x73   :  { %1077 = vmatpush3.bf16.msra.mxu1 %v1212_v5  ;;  %v1218_v11 = vld [vmem:[#allocation8 + $0x18] sm:$0xff]   ;;  %v1220_v13 = vld [vmem:[#allocation8 + $0x20] sm:$0xff]   ;;  %v1222_v15 = vld [vmem:[#allocation8 + $0x28] sm:$0xff]   ;;  %p1410_p6 = scmp.ne.s32.totalorder %s993_s4, %s1409_s26  ;;  %p1415_p8 = scmp.lt.s32.totalorder %s1409_s26, %s1409_s26 }
  0x74   :  { %1158 = vmatmul.mubr.msk.bf16.vlgmr.msra.gmra.mrb[0].mxu0 %vm142_vm1, %v1637_v3  ;;  %1078 = vmatprep.subr.bf16.mxu1 %v1213_v6  ;;  %v1223_v16 = vld [vmem:[#allocation8 + $0x70] sm:$0xff]   ;;  %v1225_v18 = vld [vmem:[#allocation8 + $0x78] sm:$0xff]   ;;  %v1010_v26 = vld [vmem:[%s1709_s3] ss:$0 sm:$0xff] }
  0x75   :  { %1163 = vmatprep.mubr.msk.bf16.mxu0 %vm1450_vm0, %v1449_v1  ;;  %v1224_v17 = vld [vmem:[#allocation8 + $0x30] sm:$0xff]   ;;  %v1226_v19 = vld [vmem:[#allocation8 + $0x38] sm:$0xff]   ;;  %v1227_v36 = vld [vmem:[#allocation9 + $0x40] sm:$0xff]   ;;  %p1416_p9 = por %p1415_p8, %p1414_p7 }
  0x76   :  { %v1228_v38 = vld [vmem:[#allocation9] sm:$0xff]   ;;  %v1229_v39 = vld [vmem:[#allocation9 + $0x48] sm:$0xff]   ;;  %v1231_v41 = vld [vmem:[#allocation9 + $0x50] sm:$0xff]  }
  0x77   :  { %1079 = vmatpush3.bf16.msra.mxu1 %v1214_v7  ;;  %v1230_v40 = vld [vmem:[#allocation9 + $0x8] sm:$0xff]   ;;  %v1232_v42 = vld [vmem:[#allocation9 + $0x10] sm:$0xff]   ;;  %v1233_v43 = vld [vmem:[#allocation9 + $0x58] sm:$0xff]   ;;  %p1417_p10 = pnand %p1416_p9, %p1410_p6 }
  0x78   :  { %1080 = vmatprep.subr.bf16.mxu1 %v1215_v8  ;;  %v1234_v44 = vld [vmem:[#allocation9 + $0x18] sm:$0xff]   ;;  %v1235_v45 = vld [vmem:[#allocation9 + $0x60] sm:$0xff]   ;;  %v1237_v47 = vld [vmem:[#allocation9 + $0x68] sm:$0xff]  }
  0x79   :  { %v1236_v46 = vld [vmem:[#allocation9 + $0x20] sm:$0xff]   ;;  %v1238_v48 = vld [vmem:[#allocation9 + $0x28] sm:$0xff]   ;;  %v1239_v49 = vld [vmem:[#allocation9 + $0x70] sm:$0xff]  }
  0x7a   :  { %v1240_v50 = vld [vmem:[#allocation9 + $0x30] sm:$0xff]   ;;  %v1241_v51 = vld [vmem:[#allocation9 + $0x78] sm:$0xff]   ;;  %v1028_v59 = vld [vmem:[%s1711_s5] ss:$0 sm:$0xff] }
  0x7b   :  { %1081 = vmatpush3.bf16.msra.mxu1 %v1216_v9  ;;  %v1242_v52 = vld [vmem:[#allocation9 + $0x38] sm:$0xff]   ;;  %v1243_v7 = vld [vmem:[#allocation11 + $0x40] sm:$0xff]  }
  0x7c   :  { %1082 = vmatprep.subr.bf16.mxu1 %v1217_v10  ;;  %v1244_v9 = vld [vmem:[#allocation11] sm:$0xff]   ;;  %v1245_v10 = vld [vmem:[#allocation11 + $0x48] sm:$0xff]  }
  0x7f   :  { %1083 = vmatpush3.bf16.msra.mxu1 %v1218_v11  ;;  %v1246_v11 = vld [vmem:[#allocation11 + $0x8] sm:$0xff]  }
  0x80   :  { %1084 = vmatprep.subr.bf16.mxu1 %v1219_v12  ;;  %v1247_v12 = vld [vmem:[#allocation11 + $0x50] sm:$0xff]  }
  0x83   :  { %1085 = vmatpush3.bf16.msra.mxu1 %v1220_v13  ;;  %v1248_v13 = vld [vmem:[#allocation11 + $0x10] sm:$0xff]  }
  0x84   :  { %1086 = vmatprep.subr.bf16.mxu1 %v1221_v14  ;;  %v1249_v14 = vld [vmem:[#allocation11 + $0x58] sm:$0xff]  }
  0x87   :  { %1087 = vmatpush3.bf16.msra.mxu1 %v1222_v15  ;;  %v1250_v15 = vld [vmem:[#allocation11 + $0x18] sm:$0xff]  }
  0x88   :  { %1088 = vmatprep.subr.bf16.mxu1 %v1223_v16  ;;  %v1251_v16 = vld [vmem:[#allocation11 + $0x60] sm:$0xff]  }
  0x8b   :  { %1089 = vmatpush3.bf16.msra.mxu1 %v1224_v17  ;;  %v1252_v17 = vld [vmem:[#allocation11 + $0x20] sm:$0xff]  }
  0x8c   :  { %1090 = vmatprep.subr.bf16.mxu1 %v1225_v18  ;;  %v1253_v18 = vld [vmem:[#allocation11 + $0x68] sm:$0xff]  }
  0x8f   :  { %1091 = vmatpush3.bf16.msra.mxu1 %v1226_v19  ;;  %v1254_v19 = vld [vmem:[#allocation11 + $0x28] sm:$0xff]  }
  0x90   :  { %1167 = vmatprep.subr.bf16.mxu1 %v1449_v1 }
 0x147   :  { %v180_v20 = vpop.f32.mrb[0].mxu0 }
 0x148   :  { %v1159_v21 = vpop.f32.mrb[1].mxu0 }
 0x149   :  { %v183_v22 = vpop.f32.mrb[2].mxu0  ;;  %v1257_v21 = vld [vmem:[#allocation11 + $0x78] sm:$0xff]  }
 0x14a   :  { %v187_v23 = vpack.c.bf16 %v183_v22, %v180_v20  ;;  %v1160_v24 = vpop.f32.mrb[3].mxu0  ;;  %v1256_v20 = vld [vmem:[#allocation11 + $0x30] sm:$0xff]   ;;  %v1258_v22 = vld [vmem:[#allocation11 + $0x38] sm:$0xff]  }
 0x14c   :  { %356 = vmatmul.mubr.bf16.vlgmr.msra.gmra.mrb[0].mxu1 %v187_v23 }
 0x14d   :  { %1169 = vmatprep.mubr.msk.bf16.mxu1 %vm1450_vm0, %v1449_v1 }
 0x21f   :  { %v1092_v25 = vpop.f32.mrb[0].mxu1 }
 0x220   :  { %v1093_v27 = vpop.f32.mrb[1].mxu1 }
 0x221   :  { %v1094_v28 = vadd.f32 %v1093_v27, %v1092_v25  ;;  %v1095_v29 = vpop.f32.mrb[2].mxu1 }
 0x222   :  { %v1096_v30 = vpop.f32.mrb[3].mxu1 }
 0x223   :  { %v358_v31 = vadd.f32 %v1094_v28, %v1010_v26  ;;  %v1097_v32 = vadd.f32 %v1096_v30, %v1095_v29  ;;  %v1046_v30 = vld [vmem:[%s1713_s7] ss:$0 sm:$0xff] }
 0x225   :  { %v361_v33 = vadd.f32 %v1097_v32, %v1010_v26  ;;  %v364_v34 = vmax.f32 %v358_v31, 0.0 }
 0x227   :  { %v365_v35 = vmax.f32 %v361_v33, 0.0 }
 0x229   :  { %v366_v37 = vpack.c.bf16 %v365_v35, %v364_v34 }
 0x22b   :  { %1162 = vmatpush3.bf16.msra.mxu0 %v366_v37 }
 0x22c   :  { %1100 = vmatprep.subr.bf16.mxu0 %v1227_v36  ;;  %v1063_v36 = vld [vmem:[%s1714_s8] ss:$0 sm:$0xff] }
 0x22e   :  { %1164 = vmatmul.mubr.msk.bf16.vlgmr.msra.gmra.mrb[4].mxu0 %vm142_vm1, %v1637_v3 }
 0x22f   :  { %576 = vmatprep.mubr.bf16.mxu0 %v366_v37  ;;  %1101 = vmatpush3.bf16.msra.mxu0 %v1228_v38 }
 0x230   :  { %1102 = vmatprep.subr.bf16.mxu0 %v1229_v39 }
 0x233   :  { %1103 = vmatpush3.bf16.msra.mxu0 %v1230_v40 }
 0x234   :  { %1104 = vmatprep.subr.bf16.mxu0 %v1231_v41 }
 0x237   :  { %1105 = vmatpush3.bf16.msra.mxu0 %v1232_v42  ;;  %v1451_v42 = vmov 0  }
 0x238   :  { %1106 = vmatprep.subr.bf16.mxu0 %v1233_v43  ;;  %1207 = vset.pattern.permute.xlu1 %v1451_v42  ;;  %v1259_v43 = vld [vmem:[#allocation12] sm:$0xff]  }
 0x239   :  { %1208 = vset.pattern.permute.xlu0 %v1451_v42 }
 0x23b   :  { %1107 = vmatpush3.bf16.msra.mxu0 %v1234_v44  ;;  %v1260_v44 = vld [vmem:[#allocation12 + $0x8] sm:$0xff]  }
 0x23c   :  { %1108 = vmatprep.subr.bf16.mxu0 %v1235_v45  ;;  %v1261_v45 = vld [vmem:[#allocation12 + $0x10] sm:$0xff]  }
 0x23f   :  { %1109 = vmatpush3.bf16.msra.mxu0 %v1236_v46  ;;  %v1262_v46 = vld [vmem:[#allocation12 + $0x18] sm:$0xff]  }
 0x240   :  { %1110 = vmatprep.subr.bf16.mxu0 %v1237_v47  ;;  %v1263_v47 = vld [vmem:[#allocation12 + $0x20] sm:$0xff]  }
 0x243   :  { %1111 = vmatpush3.bf16.msra.mxu0 %v1238_v48  ;;  %v1264_v48 = vld [vmem:[#allocation12 + $0x28] sm:$0xff]  }
 0x244   :  { %1112 = vmatprep.subr.bf16.mxu0 %v1239_v49  ;;  %v1064_v49 = vld [vmem:[#allocation2] ss:$0 sm:$0xff] }
 0x247   :  { %1113 = vmatpush3.bf16.msra.mxu0 %v1240_v50 }
 0x248   :  { %1114 = vmatprep.subr.bf16.mxu0 %v1241_v51 }
 0x24b   :  { %1115 = vmatpush3.bf16.msra.mxu0 %v1242_v52 }
 0x24c   :  { %1173 = vmatprep.subr.bf16.mxu0 %v1449_v1 }
 0x301   :  { %v401_v53 = vpop.f32.mrb[4].mxu0 }
 0x302   :  { %v1165_v54 = vpop.f32.mrb[5].mxu0 }
 0x303   :  { %v404_v55 = vpop.f32.mrb[6].mxu0 }
 0x304   :  { %v408_v56 = vpack.c.bf16 %v404_v55, %v401_v53  ;;  %v1166_v57 = vpop.f32.mrb[7].mxu0 }
 0x306   :  { %577 = vmatmul.mubr.bf16.vlgmr.msra.gmra.mrb[8].mxu0 %v408_v56 }
 0x307   :  { %1189 = vmatprep.mubr.msk.bf16.mxu0 %vm1450_vm0, %v1449_v1  ;;  %1174 = vmatpush3.bf16.msra.mxu0 %v1259_v43 }
 0x308   :  { %1175 = vmatprep.subr.bf16.mxu0 %v1449_v1 }
 0x30b   :  { %1176 = vmatpush3.bf16.msra.mxu0 %v1260_v44 }
 0x30c   :  { %1177 = vmatprep.subr.bf16.mxu0 %v1449_v1 }
 0x30f   :  { %1178 = vmatpush3.bf16.msra.mxu0 %v1261_v45 }
 0x310   :  { %1179 = vmatprep.subr.bf16.mxu0 %v1449_v1 }
 0x313   :  { %1180 = vmatpush3.bf16.msra.mxu0 %v1262_v46 }
 0x314   :  { %1181 = vmatprep.subr.bf16.mxu0 %v1449_v1 }
 0x317   :  { %1182 = vmatpush3.bf16.msra.mxu0 %v1263_v47 }
 0x318   :  { %1183 = vmatprep.subr.bf16.mxu0 %v1449_v1 }
 0x31b   :  { %1184 = vmatpush3.bf16.msra.mxu0 %v1264_v48 }
 0x31c   :  { %1185 = vmatprep.subr.bf16.mxu0 %v1449_v1 }
 0x3d9   :  { %v1116_v58 = vpop.f32.mrb[8].mxu0 }
 0x3da   :  { %v1117_v60 = vpop.f32.mrb[9].mxu0 }
 0x3db   :  { %v1118_v61 = vadd.f32 %v1117_v60, %v1116_v58  ;;  %v1119_v62 = vpop.f32.mrb[10].mxu0 }
 0x3dc   :  { %v1120_v63 = vpop.f32.mrb[11].mxu0 }
 0x3dd   :  { %v579_v0 = vadd.f32 %v1118_v61, %v1028_v59  ;;  %v1121_v2 = vadd.f32 %v1120_v63, %v1119_v62 }
 0x3df   :  { %v582_v4 = vadd.f32 %v1121_v2, %v1028_v59  ;;  %v585_v5 = vmax.f32 %v579_v0, 0.0 }
 0x3e1   :  { %v586_v6 = vmax.f32 %v582_v4, 0.0 }
 0x3e3   :  { %v587_v8 = vpack.c.bf16 %v586_v6, %v585_v5 }
 0x3e5   :  { %1168 = vmatpush3.bf16.msra.mxu1 %v587_v8 }
 0x3e6   :  { %1124 = vmatprep.subr.bf16.mxu1 %v1243_v7 }
 0x3e8   :  { %1170 = vmatmul.mubr.msk.bf16.vlgmr.msra.gmra.mrb[4].mxu1 %vm142_vm1, %v1637_v3  ;;  %v1255_v3 = vld [vmem:[#allocation11 + $0x70] sm:$0xff]  }
 0x3e9   :  { %797 = vmatprep.mubr.bf16.mxu1 %v587_v8  ;;  %1125 = vmatpush3.bf16.msra.mxu1 %v1244_v9 }
 0x3ea   :  { %1126 = vmatprep.subr.bf16.mxu1 %v1245_v10 }
 0x3ed   :  { %1127 = vmatpush3.bf16.msra.mxu1 %v1246_v11 }
 0x3ee   :  { %1128 = vmatprep.subr.bf16.mxu1 %v1247_v12 }
 0x3f1   :  { %1129 = vmatpush3.bf16.msra.mxu1 %v1248_v13 }
 0x3f2   :  { %1130 = vmatprep.subr.bf16.mxu1 %v1249_v14 }
 0x3f5   :  { %1131 = vmatpush3.bf16.msra.mxu1 %v1250_v15 }
 0x3f6   :  { %1132 = vmatprep.subr.bf16.mxu1 %v1251_v16 }
 0x3f9   :  { %1133 = vmatpush3.bf16.msra.mxu1 %v1252_v17 }
 0x3fa   :  { %1134 = vmatprep.subr.bf16.mxu1 %v1253_v18 }
 0x3fd   :  { %1135 = vmatpush3.bf16.msra.mxu1 %v1254_v19 }
 0x3fe   :  { %1136 = vmatprep.subr.bf16.mxu1 %v1255_v3  ;;  %v1265_v3 = vld [vmem:[#allocation12 + $0x30] sm:$0xff]  }
 0x3ff   :  { %1186 = vmatpush3.bf16.msra.mxu0 %v1265_v3 }
 0x400   :  { %1187 = vmatprep.subr.bf16.mxu0 %v1449_v1 }
 0x401   :  { %1137 = vmatpush3.bf16.msra.mxu1 %v1256_v20 }
 0x402   :  { %1138 = vmatprep.subr.bf16.mxu1 %v1257_v21  ;;  %v1266_v21 = vld [vmem:[#allocation12 + $0x38] sm:$0xff]  }
 0x403   :  { %1188 = vmatpush3.bf16.msra.mxu0 %v1266_v21 }
 0x405   :  { %1139 = vmatpush3.bf16.msra.mxu1 %v1258_v22 }
 0x4bb   :  { %v622_v23 = vpop.f32.mrb[4].mxu1 }
 0x4bc   :  { %v1171_v24 = vpop.f32.mrb[5].mxu1 }
 0x4bd   :  { %v625_v25 = vpop.f32.mrb[6].mxu1 }
 0x4be   :  { %v629_v26 = vpack.c.bf16 %v625_v25, %v622_v23  ;;  %v1172_v27 = vpop.f32.mrb[7].mxu1 }
 0x4bf   :  { %v1065_v27 = vld [vmem:[%s1717_s11] ss:$0 sm:$0xff] }
 0x4c0   :  { %798 = vmatmul.mubr.bf16.vlgmr.msra.gmra.mrb[8].mxu1 %v629_v26 }
 0x593   :  { %v1140_v28 = vpop.f32.mrb[8].mxu1 }
 0x594   :  { %v1141_v29 = vpop.f32.mrb[9].mxu1 }
 0x595   :  { %v1142_v31 = vadd.f32 %v1141_v29, %v1140_v28  ;;  %v1143_v32 = vpop.f32.mrb[10].mxu1 }
 0x596   :  { %v1144_v33 = vpop.f32.mrb[11].mxu1 }
 0x597   :  { %v1145_v34 = vadd.f32 %v1144_v33, %v1143_v32  ;;  %v1663_v35 = vadd.f32 %v1142_v31, %v1046_v30 }
 0x599   :  { %v1668_v37 = vadd.f32 %v1145_v34, %v1046_v30  ;;  %v806_v38 = vmax.f32 %v1663_v35, 0.0 }
 0x59b   :  { %v807_v39 = vmax.f32 %v1668_v37, 0.0  ;;  %v815_v40 = vmul.f32 %v1063_v36, %v806_v38 }
 0x59d   :  { %817 = vadd.xlane.f32.xlu0 %v815_v40  ;;  %v816_v41 = vmul.f32 %v1063_v36, %v807_v39 }
 0x5a1   :  { %819 = vadd.xlane.f32.xlu0 %v816_v41 }
 0x62a   :  { %v818_v50 = vpop.xlane.xlu0 %817 }
 0x62b   :  { %v828_v51 = vadd.f32 %v1064_v49, %v818_v50 }
 0x62d   :  { %1267 = vtanh.f32 %v828_v51 }
 0x62e   :  { %v820_v52 = vpop.xlane.xlu0 %819 }
 0x62f   :  { %v829_v53 = vadd.f32 %v1064_v49, %v820_v52 }
 0x631   :  { %1269 = vtanh.f32 %v829_v53 }
 0x637   :  { %v1268_v54 = vpop.eup %1267 }
 0x638   :  { %v833_v56 = vsel %vm832_vm2, %v1268_v54, -inf }
 0x63b   :  { %v1270_v55 = vpop.eup %1269 }
 0x63c   :  { %v834_v57 = vsel %vm832_vm2, %v1270_v55, -inf }
 0x63d   :  { %v835_v58 = vmax.f32 %v833_v56, %v834_v57 }
 0x63f   :  { %v836_v59 = vrot.slane %v835_v58, 4 }
 0x641   :  { %v837_v60 = vmax.f32 %v835_v58, %v836_v59 }
 0x643   :  { %v838_v61 = vrot.slane %v837_v60, 2 }
 0x645   :  { %v839_v62 = vmax.f32 %v837_v60, %v838_v61 }
 0x647   :  { %v840_v63 = vrot.slane %v839_v62, 1 }
 0x649   :  { %v841_v0 = vmax.f32 %v839_v62, %v840_v63 }
 0x64b   :  { %v843_v2 = vsub.f32 %v1270_v55, %v841_v0  ;;  %v842_v4 = vsub.f32 %v1268_v54, %v841_v0 }
 0x64d   :  { %v846_v5 = vmul.f32 1.442695, %v843_v2  ;;  %v844_v6 = vmul.f32 1.442695, %v842_v4 }
 0x64f   :  { %1271 = vpow2.f32 %v846_v5 }
 0x650   :  { %1273 = vpow2.f32 %v844_v6 }
 0x659   :  { %v1272_v7 = vpop.eup %1271 }
 0x65a   :  { %v1274_v8 = vpop.eup %1273  ;;  %v849_v9 = vsel %vm832_vm2, %v1272_v7, 0.0 }
 0x65b   :  { %v848_v10 = vsel %vm832_vm2, %v1274_v8, 0.0 }
 0x65c   :  { %v850_v11 = vadd.f32 %v849_v9, %v848_v10 }
 0x65e   :  { %v851_v12 = vrot.slane %v850_v11, 4 }
 0x660   :  { %v852_v13 = vadd.f32 %v851_v12, %v850_v11 }
 0x662   :  { %v853_v14 = vrot.slane %v852_v13, 2 }
 0x664   :  { %v854_v15 = vadd.f32 %v853_v14, %v852_v13 }
 0x666   :  { %v855_v16 = vrot.slane %v854_v15, 1 }
 0x668   :  { %v856_v17 = vadd.f32 %v855_v16, %v854_v15 }
 0x66a   :  { %1275 = vrcp.f32 %v856_v17 }
 0x674   :  { %v1276_v18 = vpop.eup %1275 }
 0x675   :  { %v858_v19 = vmul.f32 %v1276_v18, %v1274_v8  ;;  %v859_v20 = vmul.f32 %v1276_v18, %v1272_v7 }
 0x677   :  { %862 = vperm.xlu1 %1207, %v858_v19  }
 0x67b   :  { %867 = vperm.xlu1 %1207, %v859_v20  }
 0x6f6   :  { %v863_v22 = vpop.permute.xlu1 %862 }
 0x6f7   :  { %v870_v24 = vmul.f32 %v863_v22, %v806_v38 }
 0x6fa   :  { %v868_v23 = vpop.permute.xlu1 %867 }
 0x6fb   :  { %v871_v25 = vmul.f32 %v868_v23, %v807_v39 }
 0x6fd   :  { %v872_v26 = vpack.c.bf16 %v871_v25, %v870_v24 }
 0x6ff   :  { %1190 = vmatmul.mubr.bf16.vlgmr.msra.gmra.mrb[12].mxu0 %v872_v26 }
 0x7d2   :  { %v978_v1 = vpop.f32.mrb[12].mxu0 }
 0x7d3   :  { %v979_v28 = vadd.f32 %v1065_v27, %v978_v1  ;;  %v1191_v29 = vpop.f32.mrb[13].mxu0 }
 0x7d4   :  { %v981_v30 = vpop.f32.mrb[14].mxu0 }
 0x7d5   :  { %985 = vst [vmem:[#allocation14] sm:$0xff] %v979_v28  ;;  %v982_v31 = vadd.f32 %v1065_v27, %v981_v30  ;;  %v1192_v32 = vpop.f32.mrb[15].mxu0 }
 0x7d7   :  { %986 = vst [vmem:[#allocation14 + $0x8] sm:$0xff] %v982_v31 }
 0x7d8   :  { %1420 = shalt.err (!%p1417_p10)
}
 0x7d9   :  { %s1421_s27 = scalar_lea.hbm %s1718_s12, 256 }
 0x7da   :  { %p1422_p11 = scmp.ne.s32.totalorder %s1718_s12, %s1421_s27  ;;  %p1425_p12 = scmp.lt.u32.totalorder %s1421_s27, %s1718_s12 }
 0x7dc   :  { %p1427_p13 = pnand %p1425_p12, %p1422_p11 }
 0x7de   :  { %1430 = shalt.err (!%p1427_p13)
}
 0x7df   :  { %s1453_s1 = smov 128   ;;  %s1454_s24 = smov 8  }
 0x7e0   :  { %998 = dma.vmem_to_hbm [thread:$0]  %s993_s4, 256, %s1718_s12, [#allocation5], %s1453_s1, %s1453_s1, %s1454_s24  }
 0x7e1   :  { %1439 = dma.done.wait [#allocation5], 256  }
 0x7e2   :  { %1440 = vsyncadd [#allocation5], 4294967040 }
 0x7e3   :  { %1002 = vsyncpa [#allocation4], 1 }
 0x7e4   :  { %1003 = vsyncpa [#allocation7], 1 }
 0x7e5   :  { %1004 = vsyncpa [#allocation10], 1 }
 0x7e6   :  { %1005 = vsyncpa [#allocation13], 1 }
 0x7e7   :  { %1006 = vsyncpa [#allocation5], 1 }

</bundles_post_ra>
